<compile_context>
chip_gen: v7x
topology: tpu7x:2x2x1
jax: 0.10.0
libtpu: 0.0.40
codegen_flags: <defaults>
</compile_context>

<pallas_src>
import functools

import jax
import jax.numpy as jnp
from jax.experimental import pallas as pl
from jax.experimental.pallas import tpu as pltpu

HIDDEN = 128
OUT_PAD = 128  # lane-dense fused-head output width (policy cols | value col | zeros)


def nn_forward_kernel(x_ref, w1b1_ref, whb_ref, out_ref, *, n_actions):
    in_size = x_ref.shape[1]

    # ---- shared: Linear(In, 128) + ReLU (bf16 MXU, f32 accumulate) ----
    x = x_ref[...].astype(jnp.bfloat16)                       # [B, In]
    w1 = w1b1_ref[:in_size, :]                                 # [In, 128] bf16
    b1 = w1b1_ref[in_size:, :].astype(jnp.float32)             # [1, 128]
    h = jnp.dot(x, w1, preferred_element_type=jnp.float32) + b1
    h = jnp.maximum(h, 0.0)                                    # [B, 128] f32

    # ---- fused policy + value heads: one [128, 128] matmul ----
    wh = whb_ref[:HIDDEN, :]                                   # [128, 128] bf16
    bh = whb_ref[HIDDEN:, :].astype(jnp.float32)               # [1, 128]
    out = jnp.dot(h.astype(jnp.bfloat16), wh,
                  preferred_element_type=jnp.float32) + bh     # [B, 128] f32

    # ---- softmax over the first n_actions columns only (masked, full-width) ----
    col = jax.lax.broadcasted_iota(jnp.int32, out.shape, 1)    # [B, 128]
    is_policy = col < n_actions
    neg_big = jnp.float32(-1e30)
    m = jnp.max(jnp.where(is_policy, out, neg_big), axis=-1, keepdims=True)
    e = jnp.exp(jnp.where(is_policy, out - m, neg_big))        # 0 on non-policy cols
    s = jnp.sum(e, axis=-1, keepdims=True)
    policy = e * pl.reciprocal(s, approx=True)

    # Single unmasked, lane-dense [B, 128] store:
    # cols [0, A) = softmax probs, col A = value, cols > A = 0.
    out_ref[...] = jnp.where(is_policy, policy, out)


def nn_forward(x, w1b1, whb, n_actions):
    """Returns (policy [B, A], value [B, 1]) like the PyTorch module."""
    B = x.shape[0]
    vmem = pl.BlockSpec(memory_space=pltpu.MemorySpace.VMEM)

    fused = pl.pallas_call(
        functools.partial(nn_forward_kernel, n_actions=n_actions),
        out_shape=jax.ShapeDtypeStruct((B, OUT_PAD), jnp.float32),
        in_specs=[vmem, vmem, vmem],          # 3 specs for 3 inputs
        out_specs=vmem,
    )(x, w1b1, whb)

    policy = fused[:, :n_actions]
    value = fused[:, n_actions:n_actions + 1]
    return policy, value


# ----------------------------- parameter helpers -----------------------------

def init_raw_params(key, input_size, n_actions, hidden=HIDDEN):
    """PyTorch-Linear-like uniform(-1/sqrt(fan_in), 1/sqrt(fan_in)) init, f32."""
    ks = jax.random.split(key, 6)

    def uni(k, shape, fan_in):
        bound = 1.0 / jnp.sqrt(jnp.float32(fan_in))
        return jax.random.uniform(k, shape, jnp.float32, -bound, bound)

    w1 = uni(ks[0], (input_size, hidden), input_size)   # shared weight^T
    b1 = uni(ks[1], (1, hidden), input_size)
    wp = uni(ks[2], (hidden, n_actions), hidden)        # policy weight^T
    bp = uni(ks[3], (1, n_actions), hidden)
    wv = uni(ks[4], (hidden, 1), hidden)                # value weight^T
    bv = uni(ks[5], (1, 1), hidden)
    return (w1, b1, wp, bp, wv, bv)


def pack_params(w1, b1, wp, bp, wv, bv, out_pad=OUT_PAD):
    """Pack into the two bf16 operands the kernel expects."""
    in_size, hidden = w1.shape
    n_actions = wp.shape[1]

    # [In+1, 128]: rows 0..In-1 = weight, row In = bias
    w1b1 = jnp.concatenate([w1, b1], axis=0).astype(jnp.bfloat16)

    # [129, 128]: rows 0..127 = fused head weight (policy | value | zeros),
    #             row 128 = fused bias.
    w_heads = jnp.zeros((hidden, out_pad), jnp.float32)
    w_heads = w_heads.at[:, :n_actions].set(wp)
    w_heads = w_heads.at[:, n_actions:n_actions + 1].set(wv)
    b_heads = jnp.zeros((1, out_pad), jnp.float32)
    b_heads = b_heads.at[:, :n_actions].set(bp)
    b_heads = b_heads.at[:, n_actions:n_actions + 1].set(bv)
    whb = jnp.concatenate([w_heads, b_heads], axis=0).astype(jnp.bfloat16)
    return w1b1, whb


def reference_forward(x, raw_params):
    """Pure-JAX f32 reference matching the PyTorch forward."""
    w1, b1, wp, bp, wv, bv = raw_params
    h = jnp.maximum(x @ w1 + b1, 0.0)
    policy = jax.nn.softmax(h @ wp + bp, axis=1)
    value = h @ wv + bv
    return policy, value


if __name__ == "__main__":
    B, INPUT_SIZE, N_ACTIONS = 2, 16, 4

    key = jax.random.PRNGKey(0)
    k_x, k_p = jax.random.split(key)
    x = jax.random.normal(k_x, (B, INPUT_SIZE), jnp.float32)

    raw = init_raw_params(k_p, INPUT_SIZE, N_ACTIONS)
    w1b1, whb = pack_params(*raw)

    policy, value = nn_forward(x, w1b1, whb, N_ACTIONS)
    jax.block_until_ready((policy, value))

    ref_policy, ref_value = reference_forward(x, raw)
    assert policy.shape == (B, N_ACTIONS) and value.shape == (B, 1)
    # Tolerances account for bf16 weights + approx reciprocal in the kernel.
    assert jnp.allclose(policy, ref_policy, atol=3e-2, rtol=3e-2), "policy mismatch"
    assert jnp.allclose(value, ref_value, atol=3e-2, rtol=3e-2), "value mismatch"
    assert jnp.allclose(jnp.sum(policy, axis=1), 1.0, atol=1e-2), "softmax not normalized"

    print("KERNEL_OK")
</pallas_src>

<mosaic_0001>
module attributes {stable_mosaic.version = 11 : i64} {
  func.func @nn_forward_kernel(%arg0: memref<2x16xf32, #tpu.memory_space<vmem>>, %arg1: memref<17x128xbf16, #tpu.memory_space<vmem>>, %arg2: memref<129x128xbf16, #tpu.memory_space<vmem>>, %arg3: memref<2x128xf32, #tpu.memory_space<vmem>>) attributes {dimension_semantics = [], scalar_prefetch = 0 : i64, scratch_operands = 0 : i64, tpu.core_type = #tpu.core_type<tc>} {
    %c0 = arith.constant 0 : index
    %c0_0 = arith.constant 0 : index
    %0 = vector.load %arg0[%c0, %c0_0] : memref<2x16xf32, #tpu.memory_space<vmem>>, vector<2x16xf32>
    %1 = arith.truncf %0 : vector<2x16xf32> to vector<2x16xbf16>
    %c0_1 = arith.constant 0 : index
    %c0_2 = arith.constant 0 : index
    %2 = vector.load %arg1[%c0_1, %c0_2] : memref<17x128xbf16, #tpu.memory_space<vmem>>, vector<16x128xbf16>
    %c16 = arith.constant 16 : index
    %c0_3 = arith.constant 0 : index
    %3 = vector.load %arg1[%c16, %c0_3] : memref<17x128xbf16, #tpu.memory_space<vmem>>, vector<1x128xbf16>
    %4 = arith.extf %3 : vector<1x128xbf16> to vector<1x128xf32>
    %cst = arith.constant dense<0.000000e+00> : vector<2x128xf32>
    %5 = tpu.matmul %1, %2, %cst {dimension_numbers = #tpu.dot_dimension_numbers<[1], [0], [0], [1], [0, 0, 1, 1], [], []>} : vector<2x16xbf16>, vector<16x128xbf16>, vector<2x128xf32> -> vector<2x128xf32>
    %6 = vector.broadcast %4 : vector<1x128xf32> to vector<2x128xf32>
    %7 = arith.addf %5, %6 : vector<2x128xf32>
    %cst_4 = arith.constant 0.000000e+00 : f32
    %8 = vector.broadcast %cst_4 : f32 to vector<2x128xf32>
    %9 = arith.maximumf %7, %8 : vector<2x128xf32>
    %c0_5 = arith.constant 0 : index
    %c0_6 = arith.constant 0 : index
    %10 = vector.load %arg2[%c0_5, %c0_6] : memref<129x128xbf16, #tpu.memory_space<vmem>>, vector<128x128xbf16>
    %c128 = arith.constant 128 : index
    %c0_7 = arith.constant 0 : index
    %11 = vector.load %arg2[%c128, %c0_7] : memref<129x128xbf16, #tpu.memory_space<vmem>>, vector<1x128xbf16>
    %12 = arith.extf %11 : vector<1x128xbf16> to vector<1x128xf32>
    %13 = arith.truncf %9 : vector<2x128xf32> to vector<2x128xbf16>
    %cst_8 = arith.constant dense<0.000000e+00> : vector<2x128xf32>
    %14 = tpu.matmul %13, %10, %cst_8 {dimension_numbers = #tpu.dot_dimension_numbers<[1], [0], [0], [1], [0, 0, 1, 1], [], []>} : vector<2x128xbf16>, vector<128x128xbf16>, vector<2x128xf32> -> vector<2x128xf32>
    %15 = vector.broadcast %12 : vector<1x128xf32> to vector<2x128xf32>
    %16 = arith.addf %14, %15 : vector<2x128xf32>
    %17 = tpu.iota {dimensions = array<i32: 1>} : vector<2x128xi32>
    %c4_i32 = arith.constant 4 : i32
    %18 = vector.broadcast %c4_i32 : i32 to vector<2x128xi32>
    %19 = arith.cmpi slt, %17, %18 : vector<2x128xi32>
    %cst_9 = arith.constant -1.000000e+30 : f32
    %20 = vector.broadcast %cst_9 : f32 to vector<2x128xf32>
    %21 = arith.select %19, %16, %20 : vector<2x128xi1>, vector<2x128xf32>
    %cst_10 = arith.constant dense<0xFF800000> : vector<2xf32>
    %22 = vector.multi_reduction <maximumf>, %21, %cst_10 [1] : vector<2x128xf32> to vector<2xf32>
    %23 = vector.shape_cast %22 : vector<2xf32> to vector<2x1xf32>
    %24 = vector.broadcast %23 : vector<2x1xf32> to vector<2x128xf32>
    %25 = arith.subf %16, %24 : vector<2x128xf32>
    %cst_11 = arith.constant -1.000000e+30 : f32
    %26 = vector.broadcast %cst_11 : f32 to vector<2x128xf32>
    %27 = arith.select %19, %25, %26 : vector<2x128xi1>, vector<2x128xf32>
    %28 = math.exp %27 : vector<2x128xf32>
    %cst_12 = arith.constant dense<0.000000e+00> : vector<2xf32>
    %29 = vector.multi_reduction <add>, %28, %cst_12 [1] : vector<2x128xf32> to vector<2xf32>
    %30 = vector.shape_cast %29 : vector<2xf32> to vector<2x1xf32>
    %31 = tpu.reciprocal %30 {approx = true} : vector<2x1xf32> -> vector<2x1xf32>
    %32 = vector.broadcast %31 : vector<2x1xf32> to vector<2x128xf32>
    %33 = arith.mulf %28, %32 : vector<2x128xf32>
    %34 = arith.select %19, %33, %16 : vector<2x128xi1>, vector<2x128xf32>
    %c0_13 = arith.constant 0 : index
    %c0_14 = arith.constant 0 : index
    %35 = vector.load %arg3[%c0_13, %c0_14] : memref<2x128xf32, #tpu.memory_space<vmem>>, vector<2x128xf32>
    tpu.vector_store %arg3[%c0_13, %c0_14], %34 {strides = array<i32>} : memref<2x128xf32, #tpu.memory_space<vmem>>, vector<2x128xf32>,
    return
  }
}

</mosaic_0001>

<bundles_post_ra>
// kernel: tpu_custom_call.1
= control target key start
LH: loop header
LB: loop body
LE: loop exit
PB: predicated region body
PF: predicated region fallthrough
CT: control target
= control target key end

     0   :  { %8 = vsyncpa [#allocation3], 0  ;;  %s509_s0 = inlined_call_operand.hbm [shape: f32[2,16], index: 0, kind: input, shape index: {}]   ;;  %s510_s1 = inlined_call_operand.hbm [shape: bf16[17,128], index: 1, kind: input, shape index: {}]   ;;  %s511_s2 = inlined_call_operand.hbm [shape: bf16[129,128], index: 2, kind: input, shape index: {}]   ;;  %s512_s3 = inlined_call_operand.hbm [shape: f32[2,128], index: 3, kind: output, shape index: {}]  }
   0x1   :  { %9 = vsyncpa [#allocation6], 0 }
   0x2   :  { %10 = vsyncpa [#allocation4], 0  ;;  %s424_s12 = smov [#allocation5]   ;;  %s330_s16 = scalar_lea.hbm %s510_s1, 192 }
   0x3   :  { %s26_s13 = sshll.u32 %s424_s12, 4  ;;  %p331_p0 = scmp.ne.s32.totalorder %s510_s1, %s330_s16  ;;  %s27_s13 = int_to_ptr.vmem [resolvable:$true] %s26_s13 }
   0x4   :  { %p334_p1 = scmp.lt.u32.totalorder %s330_s16, %s510_s1 }
   0x6   :  { %p336_p2 = pnand %p334_p1, %p331_p0 }
   0x8   :  { %339 = shalt.err (!%p336_p2)
}
   0x9   :  { %s340_s21 = scalar_lea.vmem %s27_s13, 192  ;;  %p345_p4 = scmp.lt.s32.totalorder %s27_s13, %s27_s13 }
   0xa   :  { %p341_p3 = scmp.ne.s32.totalorder %s27_s13, %s340_s21  ;;  %p346_p5 = scmp.lt.s32.totalorder %s340_s21, %s340_s21 }
   0xc   :  { %p347_p6 = por %p346_p5, %p345_p4 }
   0xe   :  { %p348_p7 = pnand %p347_p6, %p341_p3 }
  0x10   :  { %351 = shalt.err (!%p348_p7)
}
  0x11   :  { %s425_s22 = smov 64   ;;  %s426_s23 = smov 4  }
  0x12   :  { %32 = dma.hbm_to_vmem [thread:$0]  %s510_s1, 192, %s27_s13, [#allocation6], %s425_s22, %s425_s22, %s426_s23  }
  0x13   :  { %s427_s26 = smov [#allocation2]   ;;  %s428_s28 = smov [#allocation7]  }
  0x14   :  { %s17_s27 = sshll.u32 %s427_s26, 4  ;;  %s38_s29 = sshll.u32 %s428_s28, 4  ;;  %s18_s27 = int_to_ptr.vmem [resolvable:$true] %s17_s27  ;;  %s39_s29 = int_to_ptr.vmem [resolvable:$true] %s38_s29 }
  0x15   :  { %s352_s5 = scalar_lea.hbm %s509_s0, 32 }
  0x16   :  { %p353_p8 = scmp.ne.s32.totalorder %s509_s0, %s352_s5  ;;  %p356_p9 = scmp.lt.u32.totalorder %s352_s5, %s509_s0 }
  0x18   :  { %p358_p10 = pnand %p356_p9, %p353_p8 }
  0x1a   :  { %361 = shalt.err (!%p358_p10)
}
  0x1b   :  { %s362_s1 = scalar_lea.vmem %s18_s27, 32  ;;  %p367_p12 = scmp.lt.s32.totalorder %s18_s27, %s18_s27 }
  0x1c   :  { %p363_p11 = scmp.ne.s32.totalorder %s18_s27, %s362_s1  ;;  %p368_p13 = scmp.lt.s32.totalorder %s362_s1, %s362_s1 }
  0x1e   :  { %p369_p0 = por %p368_p13, %p367_p12 }
  0x20   :  { %p370_p1 = pnand %p369_p0, %p363_p11 }
  0x22   :  { %373 = shalt.err (!%p370_p1)
}
  0x23   :  { %20 = dma.hbm_to_vmem [thread:$0]  %s509_s0, 32, %s18_s27, [#allocation3]  }
  0x24   :  { %s374_s14 = scalar_lea.hbm %s511_s2, 1088 }
  0x25   :  { %p375_p2 = scmp.ne.s32.totalorder %s511_s2, %s374_s14  ;;  %p378_p3 = scmp.lt.u32.totalorder %s374_s14, %s511_s2 }
  0x27   :  { %p380_p4 = pnand %p378_p3, %p375_p2 }
  0x29   :  { %383 = shalt.err (!%p380_p4)
}
  0x2a   :  { %s384_s19 = scalar_lea.vmem %s39_s29, 1088  ;;  %p389_p6 = scmp.lt.s32.totalorder %s39_s29, %s39_s29 }
  0x2b   :  { %p385_p5 = scmp.ne.s32.totalorder %s39_s29, %s384_s19  ;;  %p390_p7 = scmp.lt.s32.totalorder %s384_s19, %s384_s19 }
  0x2d   :  { %p391_p8 = por %p390_p7, %p389_p6 }
  0x2f   :  { %p392_p9 = pnand %p391_p8, %p385_p5 }
  0x31   :  { %395 = shalt.err (!%p392_p9)
}
  0x32   :  { %44 = dma.hbm_to_vmem [thread:$0]  %s511_s2, 1088, %s39_s29, [#allocation6], %s425_s22, %s425_s22, %s426_s23  }
  0x33   :  { %418 = dma.done.wait [#allocation3], 32  }
  0x34   :  { %419 = vsyncadd [#allocation3], 4294967264 }
  0x35   :  { %420 = dma.done.wait [#allocation6], 1280  }
  0x36   :  { %421 = vsyncadd [#allocation6], 4294966016  ;;  %v429_v0 = vmov 0.0   ;;  %vm430_vm0 = vmmov 0   ;;  %v317_v1 = vld [vmem:[#allocation5] sm:$0xff]   ;;  %vm71_vm1 = vcmask 130048   ;;  %v61_v12 = vlaneseq }
  0x37   :  { %283 = vmatprep.subr.bf16.mxu0 %v429_v0  ;;  %285 = vmatprep.mubr.msk.bf16.mxu0 %vm430_vm0, %v429_v0  ;;  %v55_v2 = vld [vmem:[#allocation2] sm:$0x3]  ;;  %v318_v4 = vld [vmem:[#allocation7] sm:$0xff]   ;;  %v319_v5 = vld [vmem:[#allocation7 + $0x8] sm:$0xff]   ;;  %vm231_vm3 = vcmask 1041408   ;;  %s431_s2 = smov [#allocation8]  }
  0x38   :  { %289 = vmatprep.subr.bf16.mxu1 %v429_v0  ;;  %305 = vmatprep.mubr.msk.bf16.mxu1 %vm430_vm0, %v429_v0  ;;  %v56_v3 = vpack.c.bf16 %v55_v2, %v55_v2  ;;  %v320_v6 = vld [vmem:[#allocation7 + $0x10] sm:$0xff]   ;;  %v321_v7 = vld [vmem:[#allocation7 + $0x18] sm:$0xff]   ;;  %v322_v8 = vld [vmem:[#allocation7 + $0x20] sm:$0xff]   ;;  %v62_v13 = vshrl.u32 %v61_v12, 7  ;;  %v228_v27 = vand.u32 127, %v61_v12  ;;  %s252_s21 = sshll.u32 %s431_s2, 4  ;;  %s253_s21 = int_to_ptr.vmem [resolvable:$true] %s252_s21 }
  0x39   :  { %284 = vmatpush3.bf16.msra.mxu0 %v317_v1  ;;  %290 = vmatpush3.bf16.msra.mxu1 %v318_v4  ;;  %v323_v9 = vld [vmem:[#allocation7 + $0x28] sm:$0xff]   ;;  %v324_v10 = vld [vmem:[#allocation7 + $0x30] sm:$0xff]   ;;  %v325_v11 = vld [vmem:[#allocation7 + $0x38] sm:$0xff]   ;;  %s396_s22 = scalar_lea.vmem %s253_s21, 32  ;;  %p401_p11 = scmp.lt.s32.totalorder %s253_s21, %s253_s21 }
  0x3a   :  { %291 = vmatprep.subr.bf16.mxu1 %v429_v0  ;;  %v59_v14 = vld [vmem:[#allocation5 + $0x8] sm:$0x1]  ;;  %v63_v16 = vsub.s32 0, %v62_v13  ;;  %v132_v25 = vld [vmem:[#allocation7 + $0x40] sm:$0x1]  ;;  %vm229_vm2 = vcmp.lt.s32.totalorder %v228_v27, 4  ;;  %p397_p10 = scmp.ne.s32.totalorder %s253_s21, %s396_s22  ;;  %p402_p12 = scmp.lt.s32.totalorder %s396_s22, %s396_s22 }
  0x3b   :  { %v60_v15 = vunpack.c.l.bf16 %v59_v14  ;;  %v133_v26 = vunpack.c.l.bf16 %v132_v25 }
  0x3c   :  { %286 = vmatmul.mubr.msk.bf16.vlgmr.msra.gmra.mrb[0].mxu0 %vm71_vm1, %v56_v3  ;;  %p403_p13 = por %p402_p12, %p401_p11 }
  0x3d   :  { %292 = vmatpush3.bf16.msra.mxu1 %v319_v5  ;;  %v64_v17 = vrot.slane %v60_v15, %v63_v16  ;;  %v138_v28 = vrot.slane %v133_v26, %v63_v16 }
  0x3e   :  { %293 = vmatprep.subr.bf16.mxu1 %v429_v0  ;;  %p404_p0 = pnand %p403_p13, %p397_p10 }
  0x41   :  { %294 = vmatpush3.bf16.msra.mxu1 %v320_v6 }
  0x42   :  { %295 = vmatprep.subr.bf16.mxu1 %v429_v0 }
  0x45   :  { %296 = vmatpush3.bf16.msra.mxu1 %v321_v7 }
  0x46   :  { %297 = vmatprep.subr.bf16.mxu1 %v429_v0 }
  0x49   :  { %298 = vmatpush3.bf16.msra.mxu1 %v322_v8 }
  0x4a   :  { %299 = vmatprep.subr.bf16.mxu1 %v429_v0 }
  0x4d   :  { %300 = vmatpush3.bf16.msra.mxu1 %v323_v9 }
  0x4e   :  { %301 = vmatprep.subr.bf16.mxu1 %v429_v0 }
  0x51   :  { %302 = vmatpush3.bf16.msra.mxu1 %v324_v10 }
  0x52   :  { %303 = vmatprep.subr.bf16.mxu1 %v429_v0 }
  0x55   :  { %304 = vmatpush3.bf16.msra.mxu1 %v325_v11 }
 0x10f   :  { %v109_v18 = vpop.f32.mrb[0].mxu0 }
 0x110   :  { %v110_v19 = vadd.f32 %v109_v18, %v64_v17  ;;  %v287_v20 = vpop.f32.mrb[1].mxu0 }
 0x111   :  { %v112_v21 = vpop.f32.mrb[2].mxu0 }
 0x112   :  { %v115_v22 = vmax.f32 %v110_v19, 0.0  ;;  %v288_v23 = vpop.f32.mrb[3].mxu0 }
 0x114   :  { %v134_v24 = vpack.c.bf16 %v115_v22, %v115_v22 }
 0x116   :  { %306 = vmatmul.mubr.bf16.vlgmr.msra.gmra.mrb[0].mxu1 %v134_v24 }
 0x1e9   :  { %v221_v29 = vpop.f32.mrb[0].mxu1 }
 0x1ea   :  { %v222_v30 = vadd.f32 %v221_v29, %v138_v28  ;;  %v307_v31 = vpop.f32.mrb[1].mxu1 }
 0x1eb   :  { %v224_v32 = vpop.f32.mrb[2].mxu1 }
 0x1ec   :  { %v308_v33 = vpop.f32.mrb[3].mxu1  ;;  %v230_v34 = vsel %vm229_vm2, %v222_v30, -1e+30 }
 0x1ed   :  { %v232_v35 = vsel %vm231_vm3, %v230_v34, -inf }
 0x1ee   :  { %233 = vmax.xlane.f32.xlu0 %v232_v35 }
 0x27b   :  { %v234_v36 = vpop.xlane.xlu0 %233 }
 0x27c   :  { %v235_v37 = vsub.f32 %v222_v30, %v234_v36 }
 0x27e   :  { %v236_v38 = vsel %vm229_vm2, %v235_v37, -1e+30 }
 0x27f   :  { %v237_v39 = vmul.f32 1.442695, %v236_v38 }
 0x281   :  { %326 = vpow2.f32 %v237_v39 }
 0x28b   :  { %v327_v40 = vpop.eup %326 }
 0x28c   :  { %v239_v41 = vsel %vm231_vm3, %v327_v40, 0.0 }
 0x28d   :  { %240 = vadd.xlane.f32.xlu0 %v239_v41 }
 0x31a   :  { %v241_v42 = vpop.xlane.xlu0 %240 }
 0x31b   :  { %328 = vrcp.f32 %v241_v42 }
 0x325   :  { %v329_v43 = vpop.eup %328 }
 0x326   :  { %v243_v44 = vmul.f32 %v329_v43, %v327_v40 }
 0x328   :  { %v244_v45 = vsel %vm229_vm2, %v243_v44, %v222_v30 }
 0x329   :  { %245 = vst [vmem:[#allocation8] sm:$0x3] %v244_v45 }
 0x32a   :  { %407 = shalt.err (!%p404_p0)
}
 0x32b   :  { %s408_s25 = scalar_lea.hbm %s512_s3, 32 }
 0x32c   :  { %p409_p1 = scmp.ne.s32.totalorder %s512_s3, %s408_s25  ;;  %p412_p2 = scmp.lt.u32.totalorder %s408_s25, %s512_s3 }
 0x32e   :  { %p414_p3 = pnand %p412_p2, %p409_p1 }
 0x330   :  { %417 = shalt.err (!%p414_p3)
}
 0x331   :  { %255 = dma.vmem_to_hbm [thread:$0]  %s253_s21, 32, %s512_s3, [#allocation4]  }
 0x332   :  { %422 = dma.done.wait [#allocation4], 32  }
 0x333   :  { %423 = vsyncadd [#allocation4], 4294967264 }
 0x334   :  { %259 = vsyncpa [#allocation3], 1 }
 0x335   :  { %260 = vsyncpa [#allocation6], 1 }
 0x336   :  { %261 = vsyncpa [#allocation4], 1 }

</bundles_post_ra>
